<compile_context>
chip_gen: v7x
topology: tpu7x:2x2x1
jax: 0.10.0
libtpu: 0.0.40
codegen_flags: <defaults>
</compile_context>

<pallas_src>
import jax
import jax.numpy as jnp
import numpy as np
from jax.experimental import pallas as pl
from jax.experimental.pallas import tpu as pltpu


def attention(x, wqkv, wproj, bproj, num_heads, *, batch_per_step=None):
    """x: (B, N, C); wqkv: (C, 3C); wproj: (C, C); bproj: (C,)."""
    B, N, C = x.shape
    H = num_heads
    hd = C // H
    scale = hd ** (-0.5)                      # qk_scale=None -> head_dim**-0.5
    Cp = ((C + 127) // 128) * 128             # lane-dense padded output width

    # nb = batch elements per grid step.  Default: whole batch in one step
    # (best on single-TC v5e/v6e).  Pass batch_per_step=1 on v7x (2 TCs).
    nb = B if batch_per_step is None else batch_per_step
    assert B % nb == 0
    rows = nb * N

    # Host-side (free) re-layouts: flatten tokens, pad proj to 128 lanes.
    x2d = x.reshape(B * N, C)
    wp_pad = jnp.zeros((C, Cp), wproj.dtype).at[:, :C].set(wproj)
    bp_pad = jnp.zeros((1, Cp), bproj.dtype).at[0, :C].set(bproj)

    def kernel(x_ref, wqkv_ref, wp_ref, bp_ref, o_ref):
        xx = x_ref[...]                                            # (rows, C)
        # Fused QKV projection: one lane-dense MXU matmul, 3C = 96 lanes.
        qkv = jnp.dot(xx, wqkv_ref[...],
                      preferred_element_type=jnp.float32)          # (rows, 3C)

        # Tiny static batch/head loops, fully unrolled at trace time.
        # qkv column order is (s, h, d) with s in {q,k,v}, matching the
        # PyTorch reshape(B, N, 3, H, hd).
        batch_outs = []
        for b in range(nb):
            r0 = b * N
            head_outs = []
            for h in range(H):
                q = qkv[r0:r0 + N, 0 * C + h * hd: 0 * C + (h + 1) * hd]
                k = qkv[r0:r0 + N, 1 * C + h * hd: 1 * C + (h + 1) * hd]
                v = qkv[r0:r0 + N, 2 * C + h * hd: 2 * C + (h + 1) * hd]
                # Scores: contract hd of both operands (no explicit k.T).
                s = jnp.einsum('nd,md->nm', q, k,
                               preferred_element_type=jnp.float32) * scale
                s = s - jnp.max(s, axis=-1, keepdims=True)
                e = jnp.exp(s)
                p = e * pl.reciprocal(jnp.sum(e, axis=-1, keepdims=True),
                                      approx=False)
                head_outs.append(jnp.dot(p, v,
                                         preferred_element_type=jnp.float32))
            # Concat heads along lanes (h, d) order == PyTorch concat-heads.
            batch_outs.append(jnp.concatenate(head_outs, axis=-1))  # (N, C)
        o = batch_outs[0] if nb == 1 else jnp.concatenate(batch_outs, axis=0)

        # Single lane-dense output projection (+ bias); unmasked 128-lane store.
        y = jnp.dot(o, wp_ref[...],
                    preferred_element_type=jnp.float32) + bp_ref[...]
        o_ref[...] = y.astype(o_ref.dtype)                          # (rows, Cp)

    out2d = pl.pallas_call(
        kernel,
        out_shape=jax.ShapeDtypeStruct((B * N, Cp), x.dtype),
        grid=(B // nb,),
        in_specs=[
            pl.BlockSpec((rows, C), lambda i: (i, 0)),       # activations
            pl.BlockSpec((C, 3 * C), lambda i: (0, 0)),      # fused qkv weight
            pl.BlockSpec((C, Cp), lambda i: (0, 0)),         # padded proj weight
            pl.BlockSpec((1, Cp), lambda i: (0, 0)),         # padded proj bias
        ],
        out_specs=pl.BlockSpec((rows, Cp), lambda i: (i, 0)),
        compiler_params=pltpu.CompilerParams(
            dimension_semantics=("parallel",)),
    )(x2d, wqkv, wp_pad, bp_pad)

    # Strip lane padding, restore (B, N, C).
    return out2d[:, :C].reshape(B, N, C)


def ref_attention(x, wqkv, wproj, bproj, num_heads):
    """Pure-JAX reference matching the PyTorch forward exactly."""
    B, N, C = x.shape
    H = num_heads
    hd = C // H
    qkv = (x @ wqkv).reshape(B, N, 3, H, hd).transpose(2, 0, 3, 1, 4)
    q, k, v = qkv[0], qkv[1], qkv[2]
    attn = jax.nn.softmax((q @ jnp.swapaxes(k, -2, -1)) * hd ** (-0.5), axis=-1)
    out = (attn @ v).transpose(0, 2, 1, 3).reshape(B, N, C)
    return out @ wproj + bproj


if __name__ == "__main__":
    B, N, C = 2, 8, 32
    num_heads = 4

    key = jax.random.PRNGKey(0)
    k1, k2, k3, k4 = jax.random.split(key, 4)
    f32 = jnp.float32

    x = jax.random.normal(k1, (B, N, C), f32)
    wqkv = 0.02 * jax.random.normal(k2, (C, 3 * C), f32)   # qkv_bias=False
    wproj = 0.02 * jax.random.normal(k3, (C, C), f32)
    bproj = 0.02 * jax.random.normal(k4, (C,), f32)

    out = jax.block_until_ready(attention(x, wqkv, wproj, bproj, num_heads))
    ref = jax.block_until_ready(ref_attention(x, wqkv, wproj, bproj, num_heads))
    np.testing.assert_allclose(np.asarray(out), np.asarray(ref),
                               rtol=1e-5, atol=1e-5)
    print("KERNEL_OK")
</pallas_src>

<mosaic_0001>
module attributes {stable_mosaic.version = 11 : i64} {
  func.func @kernel(%arg0: i32, %arg1: memref<16x32xf32, #tpu.memory_space<vmem>>, %arg2: memref<32x96xf32, #tpu.memory_space<vmem>>, %arg3: memref<32x128xf32, #tpu.memory_space<vmem>>, %arg4: memref<1x128xf32, #tpu.memory_space<vmem>>, %arg5: memref<16x128xf32, #tpu.memory_space<vmem>>) attributes {dimension_semantics = [#tpu.dimension_semantics<parallel>], iteration_bounds = array<i64: 1>, scalar_prefetch = 0 : i64, scratch_operands = 0 : i64, tpu.core_type = #tpu.core_type<tc>, window_params = [{transform_indices = @transform_0, window_bounds = array<i64: 16, 32>}, {pipeline_mode = #tpu.pipeline_mode<synchronous>, transform_indices = @transform_1, window_bounds = array<i64: 32, 96>}, {pipeline_mode = #tpu.pipeline_mode<synchronous>, transform_indices = @transform_2, window_bounds = array<i64: 32, 128>}, {pipeline_mode = #tpu.pipeline_mode<synchronous>, transform_indices = @transform_3, window_bounds = array<i64: 1, 128>}, {transform_indices = @transform_4, window_bounds = array<i64: 16, 128>}]} {
    %c0 = arith.constant 0 : index
    %c0_0 = arith.constant 0 : index
    %0 = vector.load %arg1[%c0, %c0_0] : memref<16x32xf32, #tpu.memory_space<vmem>>, vector<16x32xf32>
    %c0_1 = arith.constant 0 : index
    %c0_2 = arith.constant 0 : index
    %1 = vector.load %arg2[%c0_1, %c0_2] : memref<32x96xf32, #tpu.memory_space<vmem>>, vector<32x96xf32>
    %cst = arith.constant dense<0.000000e+00> : vector<16x96xf32>
    %2 = tpu.matmul %0, %1, %cst {dimension_numbers = #tpu.dot_dimension_numbers<[1], [0], [0], [1], [0, 0, 1, 1], [], []>} : vector<16x32xf32>, vector<32x96xf32>, vector<16x96xf32> -> vector<16x96xf32>
    %3 = vector.extract_strided_slice %2 {offsets = [0, 0], sizes = [8, 8], strides = [1, 1]} : vector<16x96xf32> to vector<8x8xf32>
    %4 = vector.extract_strided_slice %2 {offsets = [0, 32], sizes = [8, 8], strides = [1, 1]} : vector<16x96xf32> to vector<8x8xf32>
    %5 = vector.extract_strided_slice %2 {offsets = [0, 64], sizes = [8, 8], strides = [1, 1]} : vector<16x96xf32> to vector<8x8xf32>
    "tpu.trace_start"() <{level = 10 : i32, message = "nd,md->nm"}> : () -> ()
    %cst_3 = arith.constant dense<0.000000e+00> : vector<8x8xf32>
    %6 = tpu.matmul %3, %4, %cst_3 {dimension_numbers = #tpu.dot_dimension_numbers<[1], [1], [0], [0], [0, 0, 1, 0], [], []>} : vector<8x8xf32>, vector<8x8xf32>, vector<8x8xf32> -> vector<8x8xf32>
    "tpu.trace_stop"() : () -> ()
    %cst_4 = arith.constant 0.353553385 : f32
    %7 = vector.broadcast %cst_4 : f32 to vector<8x8xf32>
    %8 = arith.mulf %6, %7 : vector<8x8xf32>
    %cst_5 = arith.constant dense<0xFF800000> : vector<8xf32>
    %9 = vector.multi_reduction <maximumf>, %8, %cst_5 [1] : vector<8x8xf32> to vector<8xf32>
    %10 = vector.shape_cast %9 : vector<8xf32> to vector<8x1xf32>
    %11 = vector.broadcast %10 : vector<8x1xf32> to vector<8x8xf32>
    %12 = arith.subf %8, %11 : vector<8x8xf32>
    %13 = math.exp %12 : vector<8x8xf32>
    %cst_6 = arith.constant dense<0.000000e+00> : vector<8xf32>
    %14 = vector.multi_reduction <add>, %13, %cst_6 [1] : vector<8x8xf32> to vector<8xf32>
    %15 = vector.shape_cast %14 : vector<8xf32> to vector<8x1xf32>
    %16 = tpu.reciprocal %15 : vector<8x1xf32> -> vector<8x1xf32>
    %17 = vector.broadcast %16 : vector<8x1xf32> to vector<8x8xf32>
    %18 = arith.mulf %13, %17 : vector<8x8xf32>
    %cst_7 = arith.constant dense<0.000000e+00> : vector<8x8xf32>
    %19 = tpu.matmul %18, %5, %cst_7 {dimension_numbers = #tpu.dot_dimension_numbers<[1], [0], [0], [1], [0, 0, 1, 1], [], []>} : vector<8x8xf32>, vector<8x8xf32>, vector<8x8xf32> -> vector<8x8xf32>
    %20 = vector.extract_strided_slice %2 {offsets = [0, 8], sizes = [8, 8], strides = [1, 1]} : vector<16x96xf32> to vector<8x8xf32>
    %21 = vector.extract_strided_slice %2 {offsets = [0, 40], sizes = [8, 8], strides = [1, 1]} : vector<16x96xf32> to vector<8x8xf32>
    %22 = vector.extract_strided_slice %2 {offsets = [0, 72], sizes = [8, 8], strides = [1, 1]} : vector<16x96xf32> to vector<8x8xf32>
    "tpu.trace_start"() <{level = 10 : i32, message = "nd,md->nm"}> : () -> ()
    %cst_8 = arith.constant dense<0.000000e+00> : vector<8x8xf32>
    %23 = tpu.matmul %20, %21, %cst_8 {dimension_numbers = #tpu.dot_dimension_numbers<[1], [1], [0], [0], [0, 0, 1, 0], [], []>} : vector<8x8xf32>, vector<8x8xf32>, vector<8x8xf32> -> vector<8x8xf32>
    "tpu.trace_stop"() : () -> ()
    %cst_9 = arith.constant 0.353553385 : f32
    %24 = vector.broadcast %cst_9 : f32 to vector<8x8xf32>
    %25 = arith.mulf %23, %24 : vector<8x8xf32>
    %cst_10 = arith.constant dense<0xFF800000> : vector<8xf32>
    %26 = vector.multi_reduction <maximumf>, %25, %cst_10 [1] : vector<8x8xf32> to vector<8xf32>
    %27 = vector.shape_cast %26 : vector<8xf32> to vector<8x1xf32>
    %28 = vector.broadcast %27 : vector<8x1xf32> to vector<8x8xf32>
    %29 = arith.subf %25, %28 : vector<8x8xf32>
    %30 = math.exp %29 : vector<8x8xf32>
    %cst_11 = arith.constant dense<0.000000e+00> : vector<8xf32>
    %31 = vector.multi_reduction <add>, %30, %cst_11 [1] : vector<8x8xf32> to vector<8xf32>
    %32 = vector.shape_cast %31 : vector<8xf32> to vector<8x1xf32>
    %33 = tpu.reciprocal %32 : vector<8x1xf32> -> vector<8x1xf32>
    %34 = vector.broadcast %33 : vector<8x1xf32> to vector<8x8xf32>
    %35 = arith.mulf %30, %34 : vector<8x8xf32>
    %cst_12 = arith.constant dense<0.000000e+00> : vector<8x8xf32>
    %36 = tpu.matmul %35, %22, %cst_12 {dimension_numbers = #tpu.dot_dimension_numbers<[1], [0], [0], [1], [0, 0, 1, 1], [], []>} : vector<8x8xf32>, vector<8x8xf32>, vector<8x8xf32> -> vector<8x8xf32>
    %37 = vector.extract_strided_slice %2 {offsets = [0, 16], sizes = [8, 8], strides = [1, 1]} : vector<16x96xf32> to vector<8x8xf32>
    %38 = vector.extract_strided_slice %2 {offsets = [0, 48], sizes = [8, 8], strides = [1, 1]} : vector<16x96xf32> to vector<8x8xf32>
    %39 = vector.extract_strided_slice %2 {offsets = [0, 80], sizes = [8, 8], strides = [1, 1]} : vector<16x96xf32> to vector<8x8xf32>
    "tpu.trace_start"() <{level = 10 : i32, message = "nd,md->nm"}> : () -> ()
    %cst_13 = arith.constant dense<0.000000e+00> : vector<8x8xf32>
    %40 = tpu.matmul %37, %38, %cst_13 {dimension_numbers = #tpu.dot_dimension_numbers<[1], [1], [0], [0], [0, 0, 1, 0], [], []>} : vector<8x8xf32>, vector<8x8xf32>, vector<8x8xf32> -> vector<8x8xf32>
    "tpu.trace_stop"() : () -> ()
    %cst_14 = arith.constant 0.353553385 : f32
    %41 = vector.broadcast %cst_14 : f32 to vector<8x8xf32>
    %42 = arith.mulf %40, %41 : vector<8x8xf32>
    %cst_15 = arith.constant dense<0xFF800000> : vector<8xf32>
    %43 = vector.multi_reduction <maximumf>, %42, %cst_15 [1] : vector<8x8xf32> to vector<8xf32>
    %44 = vector.shape_cast %43 : vector<8xf32> to vector<8x1xf32>
    %45 = vector.broadcast %44 : vector<8x1xf32> to vector<8x8xf32>
    %46 = arith.subf %42, %45 : vector<8x8xf32>
    %47 = math.exp %46 : vector<8x8xf32>
    %cst_16 = arith.constant dense<0.000000e+00> : vector<8xf32>
    %48 = vector.multi_reduction <add>, %47, %cst_16 [1] : vector<8x8xf32> to vector<8xf32>
    %49 = vector.shape_cast %48 : vector<8xf32> to vector<8x1xf32>
    %50 = tpu.reciprocal %49 : vector<8x1xf32> -> vector<8x1xf32>
    %51 = vector.broadcast %50 : vector<8x1xf32> to vector<8x8xf32>
    %52 = arith.mulf %47, %51 : vector<8x8xf32>
    %cst_17 = arith.constant dense<0.000000e+00> : vector<8x8xf32>
    %53 = tpu.matmul %52, %39, %cst_17 {dimension_numbers = #tpu.dot_dimension_numbers<[1], [0], [0], [1], [0, 0, 1, 1], [], []>} : vector<8x8xf32>, vector<8x8xf32>, vector<8x8xf32> -> vector<8x8xf32>
    %54 = vector.extract_strided_slice %2 {offsets = [0, 24], sizes = [8, 8], strides = [1, 1]} : vector<16x96xf32> to vector<8x8xf32>
    %55 = vector.extract_strided_slice %2 {offsets = [0, 56], sizes = [8, 8], strides = [1, 1]} : vector<16x96xf32> to vector<8x8xf32>
    %56 = vector.extract_strided_slice %2 {offsets = [0, 88], sizes = [8, 8], strides = [1, 1]} : vector<16x96xf32> to vector<8x8xf32>
    "tpu.trace_start"() <{level = 10 : i32, message = "nd,md->nm"}> : () -> ()
    %cst_18 = arith.constant dense<0.000000e+00> : vector<8x8xf32>
    %57 = tpu.matmul %54, %55, %cst_18 {dimension_numbers = #tpu.dot_dimension_numbers<[1], [1], [0], [0], [0, 0, 1, 0], [], []>} : vector<8x8xf32>, vector<8x8xf32>, vector<8x8xf32> -> vector<8x8xf32>
    "tpu.trace_stop"() : () -> ()
    %cst_19 = arith.constant 0.353553385 : f32
    %58 = vector.broadcast %cst_19 : f32 to vector<8x8xf32>
    %59 = arith.mulf %57, %58 : vector<8x8xf32>
    %cst_20 = arith.constant dense<0xFF800000> : vector<8xf32>
    %60 = vector.multi_reduction <maximumf>, %59, %cst_20 [1] : vector<8x8xf32> to vector<8xf32>
    %61 = vector.shape_cast %60 : vector<8xf32> to vector<8x1xf32>
    %62 = vector.broadcast %61 : vector<8x1xf32> to vector<8x8xf32>
    %63 = arith.subf %59, %62 : vector<8x8xf32>
    %64 = math.exp %63 : vector<8x8xf32>
    %cst_21 = arith.constant dense<0.000000e+00> : vector<8xf32>
    %65 = vector.multi_reduction <add>, %64, %cst_21 [1] : vector<8x8xf32> to vector<8xf32>
    %66 = vector.shape_cast %65 : vector<8xf32> to vector<8x1xf32>
    %67 = tpu.reciprocal %66 : vector<8x1xf32> -> vector<8x1xf32>
    %68 = vector.broadcast %67 : vector<8x1xf32> to vector<8x8xf32>
    %69 = arith.mulf %64, %68 : vector<8x8xf32>
    %cst_22 = arith.constant dense<0.000000e+00> : vector<8x8xf32>
    %70 = tpu.matmul %69, %56, %cst_22 {dimension_numbers = #tpu.dot_dimension_numbers<[1], [0], [0], [1], [0, 0, 1, 1], [], []>} : vector<8x8xf32>, vector<8x8xf32>, vector<8x8xf32> -> vector<8x8xf32>
    %71 = tpu.concatenate %19, %36, %53, %70 in 1 : vector<8x8xf32>, vector<8x8xf32>, vector<8x8xf32>, vector<8x8xf32> -> vector<8x32xf32>
    %72 = vector.extract_strided_slice %2 {offsets = [8, 0], sizes = [8, 8], strides = [1, 1]} : vector<16x96xf32> to vector<8x8xf32>
    %73 = vector.extract_strided_slice %2 {offsets = [8, 32], sizes = [8, 8], strides = [1, 1]} : vector<16x96xf32> to vector<8x8xf32>
    %74 = vector.extract_strided_slice %2 {offsets = [8, 64], sizes = [8, 8], strides = [1, 1]} : vector<16x96xf32> to vector<8x8xf32>
    "tpu.trace_start"() <{level = 10 : i32, message = "nd,md->nm"}> : () -> ()
    %cst_23 = arith.constant dense<0.000000e+00> : vector<8x8xf32>
    %75 = tpu.matmul %72, %73, %cst_23 {dimension_numbers = #tpu.dot_dimension_numbers<[1], [1], [0], [0], [0, 0, 1, 0], [], []>} : vector<8x8xf32>, vector<8x8xf32>, vector<8x8xf32> -> vector<8x8xf32>
    "tpu.trace_stop"() : () -> ()
    %cst_24 = arith.constant 0.353553385 : f32
    %76 = vector.broadcast %cst_24 : f32 to vector<8x8xf32>
    %77 = arith.mulf %75, %76 : vector<8x8xf32>
    %cst_25 = arith.constant dense<0xFF800000> : vector<8xf32>
    %78 = vector.multi_reduction <maximumf>, %77, %cst_25 [1] : vector<8x8xf32> to vector<8xf32>
    %79 = vector.shape_cast %78 : vector<8xf32> to vector<8x1xf32>
    %80 = vector.broadcast %79 : vector<8x1xf32> to vector<8x8xf32>
    %81 = arith.subf %77, %80 : vector<8x8xf32>
    %82 = math.exp %81 : vector<8x8xf32>
    %cst_26 = arith.constant dense<0.000000e+00> : vector<8xf32>
    %83 = vector.multi_reduction <add>, %82, %cst_26 [1] : vector<8x8xf32> to vector<8xf32>
    %84 = vector.shape_cast %83 : vector<8xf32> to vector<8x1xf32>
    %85 = tpu.reciprocal %84 : vector<8x1xf32> -> vector<8x1xf32>
    %86 = vector.broadcast %85 : vector<8x1xf32> to vector<8x8xf32>
    %87 = arith.mulf %82, %86 : vector<8x8xf32>
    %cst_27 = arith.constant dense<0.000000e+00> : vector<8x8xf32>
    %88 = tpu.matmul %87, %74, %cst_27 {dimension_numbers = #tpu.dot_dimension_numbers<[1], [0], [0], [1], [0, 0, 1, 1], [], []>} : vector<8x8xf32>, vector<8x8xf32>, vector<8x8xf32> -> vector<8x8xf32>
    %89 = vector.extract_strided_slice %2 {offsets = [8, 8], sizes = [8, 8], strides = [1, 1]} : vector<16x96xf32> to vector<8x8xf32>
    %90 = vector.extract_strided_slice %2 {offsets = [8, 40], sizes = [8, 8], strides = [1, 1]} : vector<16x96xf32> to vector<8x8xf32>
    %91 = vector.extract_strided_slice %2 {offsets = [8, 72], sizes = [8, 8], strides = [1, 1]} : vector<16x96xf32> to vector<8x8xf32>
    "tpu.trace_start"() <{level = 10 : i32, message = "nd,md->nm"}> : () -> ()
    %cst_28 = arith.constant dense<0.000000e+00> : vector<8x8xf32>
    %92 = tpu.matmul %89, %90, %cst_28 {dimension_numbers = #tpu.dot_dimension_numbers<[1], [1], [0], [0], [0, 0, 1, 0], [], []>} : vector<8x8xf32>, vector<8x8xf32>, vector<8x8xf32> -> vector<8x8xf32>
    "tpu.trace_stop"() : () -> ()
    %cst_29 = arith.constant 0.353553385 : f32
    %93 = vector.broadcast %cst_29 : f32 to vector<8x8xf32>
    %94 = arith.mulf %92, %93 : vector<8x8xf32>
    %cst_30 = arith.constant dense<0xFF800000> : vector<8xf32>
    %95 = vector.multi_reduction <maximumf>, %94, %cst_30 [1] : vector<8x8xf32> to vector<8xf32>
    %96 = vector.shape_cast %95 : vector<8xf32> to vector<8x1xf32>
    %97 = vector.broadcast %96 : vector<8x1xf32> to vector<8x8xf32>
    %98 = arith.subf %94, %97 : vector<8x8xf32>
    %99 = math.exp %98 : vector<8x8xf32>
    %cst_31 = arith.constant dense<0.000000e+00> : vector<8xf32>
    %100 = vector.multi_reduction <add>, %99, %cst_31 [1] : vector<8x8xf32> to vector<8xf32>
    %101 = vector.shape_cast %100 : vector<8xf32> to vector<8x1xf32>
    %102 = tpu.reciprocal %101 : vector<8x1xf32> -> vector<8x1xf32>
    %103 = vector.broadcast %102 : vector<8x1xf32> to vector<8x8xf32>
    %104 = arith.mulf %99, %103 : vector<8x8xf32>
    %cst_32 = arith.constant dense<0.000000e+00> : vector<8x8xf32>
    %105 = tpu.matmul %104, %91, %cst_32 {dimension_numbers = #tpu.dot_dimension_numbers<[1], [0], [0], [1], [0, 0, 1, 1], [], []>} : vector<8x8xf32>, vector<8x8xf32>, vector<8x8xf32> -> vector<8x8xf32>
    %106 = vector.extract_strided_slice %2 {offsets = [8, 16], sizes = [8, 8], strides = [1, 1]} : vector<16x96xf32> to vector<8x8xf32>
    %107 = vector.extract_strided_slice %2 {offsets = [8, 48], sizes = [8, 8], strides = [1, 1]} : vector<16x96xf32> to vector<8x8xf32>
    %108 = vector.extract_strided_slice %2 {offsets = [8, 80], sizes = [8, 8], strides = [1, 1]} : vector<16x96xf32> to vector<8x8xf32>
    "tpu.trace_start"() <{level = 10 : i32, message = "nd,md->nm"}> : () -> ()
    %cst_33 = arith.constant dense<0.000000e+00> : vector<8x8xf32>
    %109 = tpu.matmul %106, %107, %cst_33 {dimension_numbers = #tpu.dot_dimension_numbers<[1], [1], [0], [0], [0, 0, 1, 0], [], []>} : vector<8x8xf32>, vector<8x8xf32>, vector<8x8xf32> -> vector<8x8xf32>
    "tpu.trace_stop"() : () -> ()
    %cst_34 = arith.constant 0.353553385 : f32
    %110 = vector.broadcast %cst_34 : f32 to vector<8x8xf32>
    %111 = arith.mulf %109, %110 : vector<8x8xf32>
    %cst_35 = arith.constant dense<0xFF800000> : vector<8xf32>
    %112 = vector.multi_reduction <maximumf>, %111, %cst_35 [1] : vector<8x8xf32> to vector<8xf32>
    %113 = vector.shape_cast %112 : vector<8xf32> to vector<8x1xf32>
    %114 = vector.broadcast %113 : vector<8x1xf32> to vector<8x8xf32>
    %115 = arith.subf %111, %114 : vector<8x8xf32>
    %116 = math.exp %115 : vector<8x8xf32>
    %cst_36 = arith.constant dense<0.000000e+00> : vector<8xf32>
    %117 = vector.multi_reduction <add>, %116, %cst_36 [1] : vector<8x8xf32> to vector<8xf32>
    %118 = vector.shape_cast %117 : vector<8xf32> to vector<8x1xf32>
    %119 = tpu.reciprocal %118 : vector<8x1xf32> -> vector<8x1xf32>
    %120 = vector.broadcast %119 : vector<8x1xf32> to vector<8x8xf32>
    %121 = arith.mulf %116, %120 : vector<8x8xf32>
    %cst_37 = arith.constant dense<0.000000e+00> : vector<8x8xf32>
    %122 = tpu.matmul %121, %108, %cst_37 {dimension_numbers = #tpu.dot_dimension_numbers<[1], [0], [0], [1], [0, 0, 1, 1], [], []>} : vector<8x8xf32>, vector<8x8xf32>, vector<8x8xf32> -> vector<8x8xf32>
    %123 = vector.extract_strided_slice %2 {offsets = [8, 24], sizes = [8, 8], strides = [1, 1]} : vector<16x96xf32> to vector<8x8xf32>
    %124 = vector.extract_strided_slice %2 {offsets = [8, 56], sizes = [8, 8], strides = [1, 1]} : vector<16x96xf32> to vector<8x8xf32>
    %125 = vector.extract_strided_slice %2 {offsets = [8, 88], sizes = [8, 8], strides = [1, 1]} : vector<16x96xf32> to vector<8x8xf32>
    "tpu.trace_start"() <{level = 10 : i32, message = "nd,md->nm"}> : () -> ()
    %cst_38 = arith.constant dense<0.000000e+00> : vector<8x8xf32>
    %126 = tpu.matmul %123, %124, %cst_38 {dimension_numbers = #tpu.dot_dimension_numbers<[1], [1], [0], [0], [0, 0, 1, 0], [], []>} : vector<8x8xf32>, vector<8x8xf32>, vector<8x8xf32> -> vector<8x8xf32>
    "tpu.trace_stop"() : () -> ()
    %cst_39 = arith.constant 0.353553385 : f32
    %127 = vector.broadcast %cst_39 : f32 to vector<8x8xf32>
    %128 = arith.mulf %126, %127 : vector<8x8xf32>
    %cst_40 = arith.constant dense<0xFF800000> : vector<8xf32>
    %129 = vector.multi_reduction <maximumf>, %128, %cst_40 [1] : vector<8x8xf32> to vector<8xf32>
    %130 = vector.shape_cast %129 : vector<8xf32> to vector<8x1xf32>
    %131 = vector.broadcast %130 : vector<8x1xf32> to vector<8x8xf32>
    %132 = arith.subf %128, %131 : vector<8x8xf32>
    %133 = math.exp %132 : vector<8x8xf32>
    %cst_41 = arith.constant dense<0.000000e+00> : vector<8xf32>
    %134 = vector.multi_reduction <add>, %133, %cst_41 [1] : vector<8x8xf32> to vector<8xf32>
    %135 = vector.shape_cast %134 : vector<8xf32> to vector<8x1xf32>
    %136 = tpu.reciprocal %135 : vector<8x1xf32> -> vector<8x1xf32>
    %137 = vector.broadcast %136 : vector<8x1xf32> to vector<8x8xf32>
    %138 = arith.mulf %133, %137 : vector<8x8xf32>
    %cst_42 = arith.constant dense<0.000000e+00> : vector<8x8xf32>
    %139 = tpu.matmul %138, %125, %cst_42 {dimension_numbers = #tpu.dot_dimension_numbers<[1], [0], [0], [1], [0, 0, 1, 1], [], []>} : vector<8x8xf32>, vector<8x8xf32>, vector<8x8xf32> -> vector<8x8xf32>
    %140 = tpu.concatenate %88, %105, %122, %139 in 1 : vector<8x8xf32>, vector<8x8xf32>, vector<8x8xf32>, vector<8x8xf32> -> vector<8x32xf32>
    %141 = tpu.concatenate %71, %140 in 0 : vector<8x32xf32>, vector<8x32xf32> -> vector<16x32xf32>
    %c0_43 = arith.constant 0 : index
    %c0_44 = arith.constant 0 : index
    %142 = vector.load %arg3[%c0_43, %c0_44] : memref<32x128xf32, #tpu.memory_space<vmem>>, vector<32x128xf32>
    %cst_45 = arith.constant dense<0.000000e+00> : vector<16x128xf32>
    %143 = tpu.matmul %141, %142, %cst_45 {dimension_numbers = #tpu.dot_dimension_numbers<[1], [0], [0], [1], [0, 0, 1, 1], [], []>} : vector<16x32xf32>, vector<32x128xf32>, vector<16x128xf32> -> vector<16x128xf32>
    %c0_46 = arith.constant 0 : index
    %c0_47 = arith.constant 0 : index
    %144 = vector.load %arg4[%c0_46, %c0_47] : memref<1x128xf32, #tpu.memory_space<vmem>>, vector<1x128xf32>
    %145 = vector.broadcast %144 : vector<1x128xf32> to vector<16x128xf32>
    %146 = arith.addf %143, %145 : vector<16x128xf32>
    %c0_48 = arith.constant 0 : index
    %c0_49 = arith.constant 0 : index
    %147 = vector.load %arg5[%c0_48, %c0_49] : memref<16x128xf32, #tpu.memory_space<vmem>>, vector<16x128xf32>
    tpu.vector_store %arg5[%c0_48, %c0_49], %146 {strides = array<i32>} : memref<16x128xf32, #tpu.memory_space<vmem>>, vector<16x128xf32>,
    return
  }
  func.func @transform_0(%arg0: i32) -> (i32, i32) {
    %c0_i32 = arith.constant 0 : i32
    %c0_i32_0 = arith.constant 0 : i32
    return %arg0, %c0_i32 : i32, i32
  }
  func.func @transform_1(%arg0: i32) -> (i32, i32) {
    %c0_i32 = arith.constant 0 : i32
    %c0_i32_0 = arith.constant 0 : i32
    %c0_i32_1 = arith.constant 0 : i32
    return %c0_i32, %c0_i32_0 : i32, i32
  }
  func.func @transform_2(%arg0: i32) -> (i32, i32) {
    %c0_i32 = arith.constant 0 : i32
    %c0_i32_0 = arith.constant 0 : i32
    %c0_i32_1 = arith.constant 0 : i32
    return %c0_i32, %c0_i32_0 : i32, i32
  }
  func.func @transform_3(%arg0: i32) -> (i32, i32) {
    %c0_i32 = arith.constant 0 : i32
    %c0_i32_0 = arith.constant 0 : i32
    %c0_i32_1 = arith.constant 0 : i32
    return %c0_i32, %c0_i32_0 : i32, i32
  }
  func.func @transform_4(%arg0: i32) -> (i32, i32) {
    %c0_i32 = arith.constant 0 : i32
    %c0_i32_0 = arith.constant 0 : i32
    return %arg0, %c0_i32 : i32, i32
  }
}

</mosaic_0001>

<bundles_post_ra>
// kernel: tpu_custom_call.1
= control target key start
LH: loop header
LB: loop body
LE: loop exit
PB: predicated region body
PF: predicated region fallthrough
CT: control target
= control target key end

     0   :  { %9 = vsyncpa [#allocation3], 0  ;;  %s2239_s0 = inlined_call_operand.hbm [shape: f32[16,32], index: 0, kind: input, shape index: {}]   ;;  %s2240_s1 = inlined_call_operand.hbm [shape: f32[32,96], index: 1, kind: input, shape index: {}]   ;;  %s2241_s2 = inlined_call_operand.hbm [shape: f32[32,128], index: 2, kind: input, shape index: {}]   ;;  %s2242_s3 = inlined_call_operand.vmem [shape: f32[1,128], index: 3, kind: input, shape index: {}]   ;;  %s2243_s4 = inlined_call_operand.hbm [shape: f32[16,128], index: 4, kind: output, shape index: {}]  }
   0x1   :  { %10 = vsyncpa [#allocation6], 0 }
   0x2   :  { %11 = vsyncpa [#allocation4], 0  ;;  %s1956_s15 = smov [#allocation5]   ;;  %s1957_s17 = smov [#allocation2]  }
   0x3   :  { %s29_s16 = sshll.u32 %s1956_s15, 4  ;;  %s17_s18 = sshll.u32 %s1957_s17, 4  ;;  %s30_s16 = int_to_ptr.vmem [resolvable:$true] %s29_s16  ;;  %s2002_s18 = int_to_ptr.vmem [resolvable:$true] %s17_s18 }
   0x4   :  { %s1862_s21 = scalar_lea.hbm %s2240_s1, 512 }
   0x5   :  { %p1863_p0 = scmp.ne.s32.totalorder %s2240_s1, %s1862_s21  ;;  %p1866_p1 = scmp.lt.u32.totalorder %s1862_s21, %s2240_s1 }
   0x7   :  { %p1868_p2 = pnand %p1866_p1, %p1863_p0 }
   0x9   :  { %1871 = shalt.err (!%p1868_p2)
}
   0xa   :  { %s1872_s26 = scalar_lea.vmem %s30_s16, 512  ;;  %p1877_p4 = scmp.lt.s32.totalorder %s30_s16, %s30_s16 }
   0xb   :  { %p1873_p3 = scmp.ne.s32.totalorder %s30_s16, %s1872_s26  ;;  %p1878_p5 = scmp.lt.s32.totalorder %s1872_s26, %s1872_s26 }
   0xd   :  { %p1879_p6 = por %p1878_p5, %p1877_p4 }
   0xf   :  { %p1880_p7 = pnand %p1879_p6, %p1873_p3 }
  0x11   :  { %1883 = shalt.err (!%p1880_p7)
}
  0x12   :  { %s1958_s27 = smov 128   ;;  %s1959_s28 = smov 8  }
  0x13   :  { %35 = dma.hbm_to_vmem [thread:$0]  %s2240_s1, 512, %s30_s16, [#allocation6], %s1958_s27, %s1958_s27, %s1959_s28  }
  0x14   :  { %s1884_s7 = scalar_lea.hbm %s2239_s0, 256 }
  0x15   :  { %p1885_p8 = scmp.ne.s32.totalorder %s2239_s0, %s1884_s7  ;;  %p1888_p9 = scmp.lt.u32.totalorder %s1884_s7, %s2239_s0 }
  0x17   :  { %p1890_p10 = pnand %p1888_p9, %p1885_p8 }
  0x19   :  { %1893 = shalt.err (!%p1890_p10)
}
  0x1a   :  { %s1894_s12 = scalar_lea.vmem %s2002_s18, 256  ;;  %p1899_p12 = scmp.lt.s32.totalorder %s2002_s18, %s2002_s18 }
  0x1b   :  { %p1895_p11 = scmp.ne.s32.totalorder %s2002_s18, %s1894_s12  ;;  %p1900_p13 = scmp.lt.s32.totalorder %s1894_s12, %s1894_s12 }
  0x1d   :  { %p1901_p0 = por %p1900_p13, %p1899_p12 }
  0x1f   :  { %p1902_p1 = pnand %p1901_p0, %p1895_p11 }
  0x21   :  { %1905 = shalt.err (!%p1902_p1)
}
  0x22   :  { %23 = dma.hbm_to_vmem [thread:$0]  %s2239_s0, 256, %s2002_s18, [#allocation3], %s1958_s27, %s1958_s27, %s1959_s28  }
  0x23   :  { %s1960_s14 = smov [#allocation7]   ;;  %s1906_s19 = scalar_lea.hbm %s2241_s2, 512 }
  0x24   :  { %s41_s15 = sshll.u32 %s1960_s14, 4  ;;  %p1907_p2 = scmp.ne.s32.totalorder %s2241_s2, %s1906_s19  ;;  %s42_s15 = int_to_ptr.vmem [resolvable:$true] %s41_s15 }
  0x25   :  { %p1910_p3 = scmp.lt.u32.totalorder %s1906_s19, %s2241_s2 }
  0x27   :  { %p1912_p4 = pnand %p1910_p3, %p1907_p2 }
  0x29   :  { %1915 = shalt.err (!%p1912_p4)
}
  0x2a   :  { %s1916_s24 = scalar_lea.vmem %s42_s15, 512  ;;  %p1921_p6 = scmp.lt.s32.totalorder %s42_s15, %s42_s15 }
  0x2b   :  { %p1917_p5 = scmp.ne.s32.totalorder %s42_s15, %s1916_s24  ;;  %p1922_p7 = scmp.lt.s32.totalorder %s1916_s24, %s1916_s24 }
  0x2d   :  { %p1923_p8 = por %p1922_p7, %p1921_p6 }
  0x2f   :  { %p1924_p9 = pnand %p1923_p8, %p1917_p5 }
  0x31   :  { %1927 = shalt.err (!%p1924_p9)
}
  0x32   :  { %47 = dma.hbm_to_vmem [thread:$0]  %s2241_s2, 512, %s42_s15, [#allocation6], %s1958_s27, %s1958_s27, %s1959_s28  }
  0x33   :  { %1950 = dma.done.wait [#allocation3], 256  }
  0x34   :  { %1951 = vsyncadd [#allocation3], 4294967040 }
  0x35   :  { %1952 = dma.done.wait [#allocation6], 1024  }
  0x36   :  { %1953 = vsyncadd [#allocation6], 4294966272  ;;  %vm65_vm0 = vcmask 261120   ;;  %v61_v0 = vld [vmem:[#allocation5] sm:$0xff]  ;;  %v62_v1 = vld [vmem:[#allocation5 + $0x8] sm:$0xff]  ;;  %v1961_v8 = vmov 0.0  }
  0x37   :  { %v63_v2 = vld [vmem:[#allocation5 + $0x10] sm:$0xff]  ;;  %v1793_v3 = vpack.c.bf16 %v62_v1, %v61_v0  ;;  %v64_v4 = vld [vmem:[#allocation5 + $0x18] sm:$0xff]  ;;  %1702 = vmatprep.subr.mxu1 %v1961_v8  ;;  %vm1962_vm1 = vmmov 0   ;;  %s1963_s2 = smov 64   ;;  %s1964_s25 = smov 96   ;;  %vm150_vm2 = vcmask 64512  }
  0x38   :  { %v59_v5 = vld [vmem:[#allocation2] sm:$0xff]  ;;  %v1797_v6 = vpack.c.bf16 %v64_v4, %v63_v2  ;;  %v60_v7 = vld [vmem:[#allocation2 + $0x8] sm:$0xff]  ;;  %1704 = vmatprep.mubr.msk.f32.mxu1 %vm1962_vm1, %v1961_v8  ;;  %s1965_s26 = smov 88   ;;  %s1966_s29 = smov 120   ;;  %vm824_vm3 = vcmask 130048   ;;  %vm826_vm4 = vcmask 195584  }
  0x39   :  { %1699 = vmatprep.mubr.msk.f32.mxu0 %vm65_vm0, %v59_v5  ;;  %1794 = vmatprep.subr.bf16.mxu0 %v1793_v3  ;;  %s1967_s30 = smov 80   ;;  %s1968_s5 = smov 112  }
  0x3a   :  { %1796 = vmatpush3.bf16.msra.mxu0 %v1793_v3  ;;  %s1969_s6 = smov 104   ;;  %s1970_s7 = smov 72  }
  0x3b   :  { %1798 = vmatprep.subr.bf16.mxu0 %v1797_v6  ;;  %s1971_s8 = smov 48   ;;  %s1972_s9 = smov 56  }
  0x3c   :  { %s1973_s10 = smov 40   ;;  %s1974_s11 = smov 16  }
  0x3d   :  { %s1975_s12 = smov 24   ;;  %s1976_s14 = smov [#allocation8]  }
  0x3e   :  { %1800 = vmatpush3.bf16.msra.mxu0 %v1797_v6  ;;  %s1605_s15 = sshll.u32 %s1976_s14, 4  ;;  %s1606_s15 = int_to_ptr.vmem [resolvable:$true] %s1605_s15 }
  0x3f   :  { %1722 = vmatprep.subr.mxu0 %v1961_v8  ;;  %s1928_s16 = scalar_lea.vmem %s1606_s15, 256  ;;  %p1933_p11 = scmp.lt.s32.totalorder %s1606_s15, %s1606_s15 }
  0x40   :  { %p1929_p10 = scmp.ne.s32.totalorder %s1606_s15, %s1928_s16  ;;  %p1934_p12 = scmp.lt.s32.totalorder %s1928_s16, %s1928_s16 }
  0x41   :  { %1700 = vmatmul.mubr.msk.f32.vlgmr.msra.gmra.mrb[0].mxu0 %vm65_vm0, %v60_v7 }
  0x42   :  { %1724 = vmatprep.mubr.msk.f32.mxu0 %vm1962_vm1, %v1961_v8  ;;  %p1935_p13 = por %p1934_p12, %p1933_p11 }
  0x44   :  { %p1936_p0 = pnand %p1935_p13, %p1929_p10 }
 0x114   :  { %v2062_v9 = vpop.f32.mrb[0].mxu0 }
 0x115   :  { %v2064_v10 = vpop.f32.mrb[1].mxu0 }
 0x116   :  { %237 = vrot.lane.b32.xlu1 %v2064_v10, %s1963_s2  ;;  %148 = vrot.lane.b32.xlu0 %v2064_v10, %s1964_s25 }
 0x11a   :  { %315 = vrot.lane.b32.xlu1 %v2064_v10, %s1965_s26 }
 0x11e   :  { %313 = vrot.lane.b32.xlu1 %v2064_v10, %s1966_s29 }
 0x122   :  { %481 = vrot.lane.b32.xlu1 %v2064_v10, %s1967_s30 }
 0x126   :  { %479 = vrot.lane.b32.xlu1 %v2064_v10, %s1968_s5 }
 0x12a   :  { %645 = vrot.lane.b32.xlu1 %v2064_v10, %s1969_s6 }
 0x188   :  { %v238_v11 = vpop.permute.xlu1 %237  ;;  %v149_v12 = vpop.permute.xlu0 %148 }
 0x189   :  { %1703 = vmatpush3.xpose.msk.msra.mxu1 %vm150_vm2, %v149_v12 }
 0x18a   :  { %1707 = vmatprep.subr.mxu1 %v1961_v8 }
 0x18c   :  { %v316_v13 = vpop.permute.xlu1 %315  ;;  %1705 = vmatmul.mubr.msk.f32.vlgmr.msra.gmra.mrb[0].mxu1 %vm150_vm2, %v2064_v10 }
 0x18d   :  { %1708 = vmatpush3.msra.mxu1 %v238_v11  ;;  %1709 = vmatprep.mubr.msk.f32.mxu1 %vm1962_vm1, %v1961_v8 }
 0x18e   :  { %1712 = vmatprep.subr.mxu1 %v1961_v8 }
 0x190   :  { %v314_v14 = vpop.permute.xlu1 %313 }
 0x194   :  { %v482_v15 = vpop.permute.xlu1 %481 }
 0x195   :  { %1723 = vmatpush3.xpose.msk.msra.mxu0 %vm150_vm2, %v482_v15 }
 0x196   :  { %1732 = vmatprep.subr.mxu0 %v1961_v8 }
 0x198   :  { %v480_v16 = vpop.permute.xlu1 %479 }
 0x199   :  { %1725 = vmatmul.mubr.msk.f32.vlgmr.msra.gmra.mrb[2].mxu0 %vm150_vm2, %v480_v16 }
 0x19a   :  { %1734 = vmatprep.mubr.msk.f32.mxu0 %vm1962_vm1, %v1961_v8 }
 0x19c   :  { %v646_v29 = vpop.permute.xlu1 %645 }
 0x25f   :  { %v221_v17 = vpop.f32.mrb[0].mxu1 }
 0x260   :  { %v225_v18 = vmul.f32 0.35355338, %v221_v17  ;;  %v1706_v19 = vpop.f32.mrb[1].mxu1 }
 0x262   :  { %v226_v20 = vsel %vm150_vm2, %v225_v18, -inf }
 0x263   :  { %227 = vmax.xlane.f32.xlu0 %v226_v20 }
 0x26c   :  { %v553_v21 = vpop.f32.mrb[2].mxu0 }
 0x26d   :  { %v1726_v22 = vpop.f32.mrb[3].mxu0  ;;  %v2096_v23 = vmul.f32 0.35355338, %v553_v21 }
 0x26f   :  { %v558_v24 = vsel %vm150_vm2, %v2096_v23, -inf }
 0x279   :  { %647 = vrot.lane.b32.xlu0 %v2064_v10, %s1970_s7 }
 0x27d   :  { %1159 = vrot.lane.b32.xlu0 %v2062_v9, %s1968_s5 }
 0x281   :  { %1325 = vrot.lane.b32.xlu0 %v2062_v9, %s1969_s6 }
 0x2a0   :  { %559 = vmax.xlane.f32.xlu0 %v558_v24 }
 0x2f0   :  { %v228_v25 = vpop.xlane.xlu0 %227 }
 0x2f1   :  { %v229_v26 = vsub.f32 %v225_v18, %v228_v25 }
 0x2f3   :  { %v230_v27 = vmul.f32 1.442695, %v229_v26 }
 0x2f4   :  { %v648_v28 = vpop.permute.xlu0 %647 }
 0x2f5   :  { %1830 = vpow2.f32 %v230_v27  ;;  %1733 = vmatpush3.xpose.msk.msra.mxu0 %vm150_vm2, %v648_v28 }
 0x2f6   :  { %1742 = vmatprep.subr.mxu0 %v1961_v8 }
 0x2f8   :  { %1735 = vmatmul.mubr.msk.f32.vlgmr.msra.gmra.mrb[4].mxu0 %vm150_vm2, %v646_v29  ;;  %v1160_v39 = vpop.permute.xlu0 %1159 }
 0x2f9   :  { %1744 = vmatprep.mubr.msk.f32.mxu0 %vm1962_vm1, %v1961_v8 }
 0x2fc   :  { %v1326_v41 = vpop.permute.xlu0 %1325 }
 0x2ff   :  { %v1831_v30 = vpop.eup %1830 }
 0x300   :  { %v232_v31 = vsel %vm150_vm2, %v1831_v30, 0.0 }
 0x301   :  { %233 = vadd.xlane.f32.xlu1 %v232_v31 }
 0x312   :  { %829 = vrot.lane.b32.xlu1 %v2062_v9, %s1964_s25 }
 0x316   :  { %995 = vrot.lane.b32.xlu1 %v2062_v9, %s1965_s26 }
 0x31a   :  { %993 = vrot.lane.b32.xlu1 %v2062_v9, %s1966_s29 }
 0x31e   :  { %1161 = vrot.lane.b32.xlu1 %v2062_v9, %s1967_s30 }
 0x322   :  { %1327 = vrot.lane.b32.xlu1 %v2062_v9, %s1970_s7 }
 0x32d   :  { %v560_v46 = vpop.xlane.xlu0 %559 }
 0x32e   :  { %v561_v50 = vsub.f32 %v2096_v23, %v560_v46 }
 0x330   :  { %v562_v53 = vmul.f32 1.442695, %v561_v50 }
 0x38e   :  { %v234_v32 = vpop.xlane.xlu1 %233 }
 0x38f   :  { %1832 = vrcp.f32 %v234_v32 }
 0x390   :  { %1834 = vpow2.f32 %v562_v53 }
 0x392   :  { %v830_v33 = vpop.permute.xlu1 %829 }
 0x393   :  { %1743 = vmatpush3.xpose.msk.msra.mxu0 %vm150_vm2, %v830_v33 }
 0x394   :  { %1752 = vmatprep.subr.mxu0 %v1961_v8 }
 0x396   :  { %v996_v34 = vpop.permute.xlu1 %995  ;;  %1745 = vmatmul.mubr.msk.f32.vlgmr.msra.gmra.mrb[6].mxu0 %vm150_vm2, %v2062_v9 }
 0x397   :  { %1753 = vmatpush3.xpose.msk.msra.mxu0 %vm150_vm2, %v996_v34  ;;  %1754 = vmatprep.mubr.msk.f32.mxu0 %vm1962_vm1, %v1961_v8 }
 0x398   :  { %1762 = vmatprep.subr.mxu0 %v1961_v8 }
 0x399   :  { %v1833_v35 = vpop.eup %1832 }
 0x39a   :  { %v236_v36 = vmul.f32 %v1833_v35, %v1831_v30  ;;  %v994_v37 = vpop.permute.xlu1 %993  ;;  %v2149_v12 = vpop.eup %1834 }
 0x39b   :  { %1755 = vmatmul.mubr.msk.f32.vlgmr.msra.gmra.mrb[8].mxu0 %vm150_vm2, %v994_v37  ;;  %v564_v15 = vsel %vm150_vm2, %v2149_v12, 0.0 }
 0x39c   :  { %1710 = vmatmul.mubr.msk.f32.vlgmr.msra.gmra.mrb[2].mxu1 %vm150_vm2, %v236_v36  ;;  %1764 = vmatprep.mubr.msk.f32.mxu0 %vm1962_vm1, %v1961_v8 }
 0x39d   :  { %1713 = vmatpush3.xpose.msk.msra.mxu1 %vm150_vm2, %v316_v13  ;;  %1714 = vmatprep.mubr.msk.f32.mxu1 %vm1962_vm1, %v1961_v8 }
 0x39e   :  { %v1162_v38 = vpop.permute.xlu1 %1161  ;;  %1717 = vmatprep.subr.mxu1 %v1961_v8 }
 0x39f   :  { %1763 = vmatpush3.xpose.msk.msra.mxu0 %vm150_vm2, %v1162_v38 }
 0x3a0   :  { %1715 = vmatmul.mubr.msk.f32.vlgmr.msra.gmra.mrb[4].mxu1 %vm150_vm2, %v314_v14  ;;  %1772 = vmatprep.subr.mxu0 %v1961_v8 }
 0x3a1   :  { %1719 = vmatprep.mubr.msk.f32.mxu1 %vm1962_vm1, %v1961_v8 }
 0x3a2   :  { %v1328_v40 = vpop.permute.xlu1 %1327  ;;  %1765 = vmatmul.mubr.msk.f32.vlgmr.msra.gmra.mrb[10].mxu0 %vm150_vm2, %v1160_v39 }
 0x3a3   :  { %1773 = vmatpush3.xpose.msk.msra.mxu0 %vm150_vm2, %v1328_v40  ;;  %1774 = vmatprep.mubr.msk.f32.mxu0 %vm1962_vm1, %v1961_v8 }
 0x3a6   :  { %1775 = vmatmul.mubr.msk.f32.vlgmr.msra.gmra.mrb[12].mxu0 %vm150_vm2, %v1326_v41 }
 0x3cb   :  { %v719_v42 = vpop.f32.mrb[4].mxu0 }
 0x3cc   :  { %v723_v43 = vmul.f32 0.35355338, %v719_v42  ;;  %v1736_v44 = vpop.f32.mrb[5].mxu0 }
 0x3ce   :  { %v724_v45 = vsel %vm150_vm2, %v723_v43, -inf }
 0x3cf   :  { %725 = vmax.xlane.f32.xlu0 %v724_v45 }
 0x45c   :  { %v726_v48 = vpop.xlane.xlu0 %725 }
 0x45d   :  { %v727_v51 = vsub.f32 %v723_v43, %v726_v48 }
 0x45f   :  { %v728_v58 = vmul.f32 1.442695, %v727_v51 }
 0x461   :  { %1836 = vpow2.f32 %v728_v58 }
 0x469   :  { %v901_v47 = vpop.f32.mrb[6].mxu0 }
 0x46a   :  { %v1746_v49 = vpop.f32.mrb[7].mxu0  ;;  %v905_v0 = vmul.f32 0.35355338, %v901_v47 }
 0x46b   :  { %v2152_v14 = vpop.eup %1836 }
 0x46c   :  { %v906_v7 = vsel %vm150_vm2, %v905_v0, -inf  ;;  %v730_v16 = vsel %vm150_vm2, %v2152_v14, 0.0 }
 0x46e   :  { %v1067_v52 = vpop.f32.mrb[8].mxu0 }
 0x46f   :  { %v1071_v54 = vmul.f32 0.35355338, %v1067_v52  ;;  %v2143_v55 = vpop.f32.mrb[2].mxu1  ;;  %v1756_v56 = vpop.f32.mrb[9].mxu0 }
 0x470   :  { %v1711_v57 = vpop.f32.mrb[3].mxu1 }
 0x471   :  { %v1072_v59 = vsel %vm150_vm2, %v1071_v54, -inf }
 0x472   :  { %1073 = vmax.xlane.f32.xlu0 %v1072_v59 }
 0x473   :  { %v387_v60 = vpop.f32.mrb[4].mxu1 }
 0x474   :  { %v391_v61 = vmul.f32 0.35355338, %v387_v60  ;;  %v1716_v62 = vpop.f32.mrb[5].mxu1 }
 0x475   :  { %v1233_v63 = vpop.f32.mrb[10].mxu0 }
 0x476   :  { %v1766_v1 = vpop.f32.mrb[11].mxu0  ;;  %v392_v2 = vsel %vm150_vm2, %v391_v61, -inf  ;;  %v1237_v4 = vmul.f32 0.35355338, %v1233_v63 }
 0x477   :  { %393 = vmax.xlane.f32.xlu1 %v392_v2 }
 0x478   :  { %v1238_v13 = vsel %vm150_vm2, %v1237_v4, -inf }
 0x479   :  { %v1399_v3 = vpop.f32.mrb[12].mxu0 }
 0x47a   :  { %v1403_v5 = vmul.f32 0.35355338, %v1399_v3  ;;  %v1776_v6 = vpop.f32.mrb[13].mxu0 }
 0x47b   :  { %907 = vmax.xlane.f32.xlu1 %v906_v7  ;;  %v1506_v7 = vld [vmem:[#allocation7] sm:$0xff] }
 0x47c   :  { %v1404_v11 = vsel %vm150_vm2, %v1403_v5, -inf }
 0x47d   :  { %1405 = vmax.xlane.f32.xlu0 %v1404_v11  ;;  %v1507_v11 = vld [vmem:[#allocation7 + $0x8] sm:$0xff] }
 0x47f   :  { %1239 = vmax.xlane.f32.xlu1 %v1238_v13  ;;  %v1801_v13 = vpack.c.bf16 %v1507_v11, %v1506_v7 }
 0x481   :  { %565 = vadd.xlane.f32.xlu0 %v564_v15  ;;  %1802 = vmatprep.subr.bf16.mxu0 %v1801_v13  ;;  %v1508_v15 = vld [vmem:[#allocation7 + $0x10] sm:$0xff] }
 0x482   :  { %1804 = vmatpush3.bf16.msra.mxu0 %v1801_v13 }
 0x483   :  { %731 = vadd.xlane.f32.xlu1 %v730_v16  ;;  %v1509_v16 = vld [vmem:[#allocation7 + $0x18] sm:$0xff] }
 0x4ff   :  { %v1074_v17 = vpop.xlane.xlu0 %1073 }
 0x500   :  { %v1075_v18 = vsub.f32 %v1071_v54, %v1074_v17  ;;  %v1805_v17 = vpack.c.bf16 %v1509_v16, %v1508_v15 }
 0x502   :  { %v1076_v19 = vmul.f32 1.442695, %v1075_v18  ;;  %1806 = vmatprep.subr.bf16.mxu0 %v1805_v17 }
 0x503   :  { %1808 = vmatpush3.bf16.msra.mxu0 %v1805_v17 }
 0x504   :  { %1838 = vpow2.f32 %v1076_v19  ;;  %v394_v20 = vpop.xlane.xlu1 %393 }
 0x505   :  { %v395_v38 = vsub.f32 %v391_v61, %v394_v20 }
 0x507   :  { %v396_v39 = vmul.f32 1.442695, %v395_v38 }
 0x508   :  { %v908_v21 = vpop.xlane.xlu1 %907 }
 0x509   :  { %v909_v22 = vsub.f32 %v905_v0, %v908_v21 }
 0x50a   :  { %v1406_v23 = vpop.xlane.xlu0 %1405 }
 0x50b   :  { %v910_v24 = vmul.f32 1.442695, %v909_v22  ;;  %v1407_v25 = vsub.f32 %v1403_v5, %v1406_v23 }
 0x50c   :  { %v1240_v26 = vpop.xlane.xlu1 %1239 }
 0x50d   :  { %1840 = vpow2.f32 %v910_v24  ;;  %v1408_v27 = vmul.f32 1.442695, %v1407_v25  ;;  %v1241_v28 = vsub.f32 %v1237_v4, %v1240_v26 }
 0x50e   :  { %v2158_v29 = vpop.eup %1838  ;;  %v566_v42 = vpop.xlane.xlu0 %565 }
 0x50f   :  { %1842 = vpow2.f32 %v1408_v27  ;;  %v1242_v30 = vmul.f32 1.442695, %v1241_v28  ;;  %v1078_v31 = vsel %vm150_vm2, %v2158_v29, 0.0 }
 0x510   :  { %1079 = vadd.xlane.f32.xlu1 %v1078_v31  ;;  %v732_v46 = vpop.xlane.xlu1 %731 }
 0x511   :  { %1844 = vpow2.f32 %v1242_v30 }
 0x512   :  { %1846 = vpow2.f32 %v396_v39  ;;  %v1644_v39 = vld [vmem:[%s2242_s3] ss:$0 sm:$0xff] }
 0x517   :  { %v2162_v32 = vpop.eup %1840 }
 0x518   :  { %v912_v33 = vsel %vm150_vm2, %v2162_v32, 0.0 }
 0x519   :  { %v2166_v34 = vpop.eup %1842  ;;  %913 = vadd.xlane.f32.xlu0 %v912_v33 }
 0x51a   :  { %v1410_v35 = vsel %vm150_vm2, %v2166_v34, 0.0 }
 0x51b   :  { %v2170_v36 = vpop.eup %1844  ;;  %1411 = vadd.xlane.f32.xlu1 %v1410_v35 }
 0x51c   :  { %v1244_v37 = vsel %vm150_vm2, %v2170_v36, 0.0  ;;  %v1847_v40 = vpop.eup %1846 }
 0x51d   :  { %1245 = vadd.xlane.f32.xlu0 %v1244_v37  ;;  %v398_v41 = vsel %vm150_vm2, %v1847_v40, 0.0 }
 0x52c   :  { %569 = vrot.lane.b32.xlu1 %v2064_v10, %s1971_s8 }
 0x533   :  { %403 = vrot.lane.b32.xlu0 %v2064_v10, %s1972_s9 }
 0x537   :  { %917 = vrot.lane.b32.xlu0 %v2062_v9, %s1963_s2 }
 0x53b   :  { %1249 = vrot.lane.b32.xlu0 %v2062_v9, %s1971_s8 }
 0x550   :  { %399 = vadd.xlane.f32.xlu1 %v398_v41 }
 0x561   :  { %735 = vrot.lane.b32.xlu1 %v2064_v10, %s1973_s10 }
 0x565   :  { %1083 = vrot.lane.b32.xlu1 %v2062_v9, %s1972_s9 }
 0x569   :  { %1415 = vrot.lane.b32.xlu1 %v2062_v9, %s1973_s10 }
 0x59d   :  { %v1080_v47 = vpop.xlane.xlu1 %1079 }
 0x5a6   :  { %v914_v43 = vpop.xlane.xlu0 %913 }
 0x5a8   :  { %v1412_v48 = vpop.xlane.xlu1 %1411 }
 0x5aa   :  { %v1246_v44 = vpop.xlane.xlu0 %1245 }
 0x5ac   :  { %v570_v49 = vpop.permute.xlu1 %569 }
 0x5ae   :  { %v404_v45 = vpop.permute.xlu0 %403 }
 0x5af   :  { %1718 = vmatpush3.msra.mxu1 %v404_v45 }
 0x5b0   :  { %1727 = vmatprep.subr.mxu1 %v1961_v8 }
 0x5b2   :  { %v918_v58 = vpop.permute.xlu0 %917 }
 0x5b6   :  { %v1250_v0 = vpop.permute.xlu0 %1249 }
 0x5dd   :  { %v400_v50 = vpop.xlane.xlu1 %399 }
 0x5de   :  { %1848 = vrcp.f32 %v400_v50 }
 0x5df   :  { %1850 = vrcp.f32 %v566_v42 }
 0x5e0   :  { %1852 = vrcp.f32 %v732_v46 }
 0x5e1   :  { %1854 = vrcp.f32 %v914_v43  ;;  %v736_v54 = vpop.permute.xlu1 %735 }
 0x5e2   :  { %1856 = vrcp.f32 %v1080_v47 }
 0x5e3   :  { %1858 = vrcp.f32 %v1246_v44 }
 0x5e4   :  { %1860 = vrcp.f32 %v1412_v48 }
 0x5e5   :  { %v1084_v61 = vpop.permute.xlu1 %1083 }
 0x5e8   :  { %v1849_v10 = vpop.eup %1848 }
 0x5e9   :  { %v402_v51 = vmul.f32 %v1849_v10, %v1847_v40  ;;  %v1851_v52 = vpop.eup %1850  ;;  %v1416_v3 = vpop.permute.xlu1 %1415 }
 0x5ea   :  { %v568_v9 = vmul.f32 %v1851_v52, %v2149_v12  ;;  %v1853_v53 = vpop.eup %1852 }
 0x5eb   :  { %1720 = vmatmul.mubr.msk.f32.vlgmr.msra.gmra.mrb[6].mxu1 %vm150_vm2, %v402_v51  ;;  %v734_v56 = vmul.f32 %v1853_v53, %v2152_v14  ;;  %v1855_v57 = vpop.eup %1854 }
 0x5ec   :  { %1728 = vmatpush3.msra.mxu1 %v570_v49  ;;  %1729 = vmatprep.mubr.msk.f32.mxu1 %vm1962_vm1, %v1961_v8  ;;  %v916_v59 = vmul.f32 %v1855_v57, %v2162_v32  ;;  %v1857_v60 = vpop.eup %1856 }
 0x5ed   :  { %1737 = vmatprep.subr.mxu1 %v1961_v8  ;;  %v1082_v62 = vmul.f32 %v1857_v60, %v2158_v29  ;;  %v1859_v63 = vpop.eup %1858 }
 0x5ee   :  { %v1248_v1 = vmul.f32 %v1859_v63, %v2170_v36  ;;  %v1861_v2 = vpop.eup %1860 }
 0x5ef   :  { %1730 = vmatmul.mubr.msk.f32.vlgmr.msra.gmra.mrb[8].mxu1 %vm150_vm2, %v568_v9  ;;  %v1414_v4 = vmul.f32 %v1861_v2, %v2166_v34 }
 0x5f0   :  { %1738 = vmatpush3.msra.mxu1 %v736_v54  ;;  %1739 = vmatprep.mubr.msk.f32.mxu1 %vm1962_vm1, %v1961_v8 }
 0x5f1   :  { %1747 = vmatprep.subr.mxu1 %v1961_v8 }
 0x5f3   :  { %1740 = vmatmul.mubr.msk.f32.vlgmr.msra.gmra.mrb[10].mxu1 %vm150_vm2, %v734_v56 }
 0x5f4   :  { %1748 = vmatpush3.msra.mxu1 %v918_v58  ;;  %1749 = vmatprep.mubr.msk.f32.mxu1 %vm1962_vm1, %v1961_v8 }
 0x5f5   :  { %1757 = vmatprep.subr.mxu1 %v1961_v8 }
 0x5f7   :  { %1750 = vmatmul.mubr.msk.f32.vlgmr.msra.gmra.mrb[12].mxu1 %vm150_vm2, %v916_v59 }
 0x5f8   :  { %1758 = vmatpush3.msra.mxu1 %v1084_v61  ;;  %1759 = vmatprep.mubr.msk.f32.mxu1 %vm1962_vm1, %v1961_v8 }
 0x5f9   :  { %1767 = vmatprep.subr.mxu1 %v1961_v8 }
 0x5fb   :  { %1760 = vmatmul.mubr.msk.f32.vlgmr.msra.gmra.mrb[14].mxu1 %vm150_vm2, %v1082_v62 }
 0x5fc   :  { %1768 = vmatpush3.msra.mxu1 %v1250_v0  ;;  %1769 = vmatprep.mubr.msk.f32.mxu1 %vm1962_vm1, %v1961_v8 }
 0x5fd   :  { %1777 = vmatprep.subr.mxu1 %v1961_v8 }
 0x5ff   :  { %1770 = vmatmul.mubr.msk.f32.vlgmr.msra.gmra.mrb[16].mxu1 %vm150_vm2, %v1248_v1 }
 0x600   :  { %1778 = vmatpush3.msra.mxu1 %v1416_v3  ;;  %1779 = vmatprep.mubr.msk.f32.mxu1 %vm1962_vm1, %v1961_v8 }
 0x603   :  { %1780 = vmatmul.mubr.msk.f32.vlgmr.msra.gmra.mrb[18].mxu1 %vm150_vm2, %v1414_v4 }
 0x6be   :  { %v475_v5 = vpop.f32.mrb[6].mxu1 }
 0x6bf   :  { %812 = vrot.lane.b32.xlu0 %v475_v5, %s1959_s28  ;;  %v1721_v6 = vpop.f32.mrb[7].mxu1 }
 0x6c2   :  { %v641_v12 = vpop.f32.mrb[8].mxu1 }
 0x6c3   :  { %816 = vrot.lane.b32.xlu1 %v641_v12, %s1974_s11  ;;  %v1731_v14 = vpop.f32.mrb[9].mxu1 }
 0x6c6   :  { %v807_v8 = vpop.f32.mrb[10].mxu1 }
 0x6c7   :  { %820 = vrot.lane.b32.xlu1 %v807_v8, %s1975_s12  ;;  %v1741_v18 = vpop.f32.mrb[11].mxu1 }
 0x6ca   :  { %v989_v19 = vpop.f32.mrb[12].mxu1 }
 0x6cb   :  { %v1751_v20 = vpop.f32.mrb[13].mxu1 }
 0x6ce   :  { %v1155_v21 = vpop.f32.mrb[14].mxu1 }
 0x6cf   :  { %1492 = vrot.lane.b32.xlu0 %v1155_v21, %s1959_s28  ;;  %v1761_v22 = vpop.f32.mrb[15].mxu1 }
 0x6d2   :  { %v1321_v23 = vpop.f32.mrb[16].mxu1 }
 0x6d3   :  { %1496 = vrot.lane.b32.xlu0 %v1321_v23, %s1974_s11  ;;  %v1771_v24 = vpop.f32.mrb[17].mxu1 }
 0x6d6   :  { %v1487_v25 = vpop.f32.mrb[18].mxu1 }
 0x6d7   :  { %1500 = vrot.lane.b32.xlu1 %v1487_v25, %s1975_s12  ;;  %v1781_v26 = vpop.f32.mrb[19].mxu1 }
 0x731   :  { %v813_v27 = vpop.permute.xlu0 %812 }
 0x732   :  { %v823_v29 = vsel %vm150_vm2, %v2143_v55, %v813_v27 }
 0x735   :  { %v817_v28 = vpop.permute.xlu1 %816 }
 0x736   :  { %v825_v30 = vsel %vm824_vm3, %v823_v29, %v817_v28 }
 0x739   :  { %v821_v31 = vpop.permute.xlu1 %820 }
 0x73a   :  { %v827_v32 = vsel %vm826_vm4, %v825_v30, %v821_v31 }
 0x73b   :  { %1790 = vmatprep.mubr.msk.f32.mxu0 %vm65_vm0, %v827_v32 }
 0x741   :  { %v1493_v33 = vpop.permute.xlu0 %1492 }
 0x742   :  { %v1503_v35 = vsel %vm150_vm2, %v989_v19, %v1493_v33 }
 0x745   :  { %v1497_v34 = vpop.permute.xlu0 %1496 }
 0x746   :  { %v1504_v36 = vsel %vm824_vm3, %v1503_v35, %v1497_v34 }
 0x749   :  { %v1501_v37 = vpop.permute.xlu1 %1500 }
 0x74a   :  { %v1505_v38 = vsel %vm826_vm4, %v1504_v36, %v1501_v37 }
 0x74b   :  { %1791 = vmatmul.mubr.msk.f32.vlgmr.msra.gmra.mrb[14].mxu0 %vm65_vm0, %v1505_v38 }
 0x81e   :  { %v1792_v55 = vpop.f32.mrb[14].mxu0 }
 0x81f   :  { %v1595_v40 = vadd.f32 %v1792_v55, %v1644_v39  ;;  %v1589_v41 = vpop.f32.mrb[15].mxu0 }
 0x820   :  { %v1590_v42 = vadd.f32 %v1644_v39, %v1589_v41 }
 0x821   :  { %1599 = vst [vmem:[#allocation8 + $0x8] sm:$0xff] %v1595_v40 }
 0x822   :  { %1598 = vst [vmem:[#allocation8] sm:$0xff] %v1590_v42 }
 0x823   :  { %1939 = shalt.err (!%p1936_p0)
}
 0x824   :  { %s1940_s3 = scalar_lea.hbm %s2243_s4, 256 }
 0x825   :  { %p1941_p1 = scmp.ne.s32.totalorder %s2243_s4, %s1940_s3  ;;  %p1944_p2 = scmp.lt.u32.totalorder %s1940_s3, %s2243_s4 }
 0x827   :  { %p1946_p3 = pnand %p1944_p2, %p1941_p1 }
 0x829   :  { %1949 = shalt.err (!%p1946_p3)
}
 0x82a   :  { %1611 = dma.vmem_to_hbm [thread:$0]  %s1606_s15, 256, %s2243_s4, [#allocation4], %s1958_s27, %s1958_s27, %s1959_s28  }
 0x82b   :  { %1954 = dma.done.wait [#allocation4], 256  }
 0x82c   :  { %1955 = vsyncadd [#allocation4], 4294967040 }
 0x82d   :  { %1615 = vsyncpa [#allocation3], 1 }
 0x82e   :  { %1616 = vsyncpa [#allocation6], 1 }
 0x82f   :  { %1617 = vsyncpa [#allocation4], 1 }

</bundles_post_ra>
